<compile_context>
chip_gen: v7x
topology: tpu7x:2x2x1
jax: 0.10.0
libtpu: 0.0.40
codegen_flags: <defaults>
</compile_context>

<pallas_src>
import functools

import jax
import jax.numpy as jnp
from jax.experimental import pallas as pl
from jax.experimental.pallas import tpu as pltpu


def _round_up(x, m):
    return ((x + m - 1) // m) * m


@functools.lru_cache(maxsize=1)
def _vmem_limit_bytes():
    """~0.75x physical VMEM, capped at 96 MiB (v5e/v6e: 128 MiB, v7x: 64 MiB)."""
    try:
        cap = int(pltpu.get_tpu_info().vmem_capacity_bytes)
    except Exception:
        cap = 64 * 1024 * 1024  # conservative (v7x) fallback
    return min(cap * 3 // 4, 96 * 1024 * 1024)


def _pick_tile(dim, cap, align, allow_pad=False):
    """Largest tile <= cap (multiple of `align`) dividing round_up(dim, align).

    With allow_pad=True, a cap-sized tile is accepted instead if the exact
    divisor is much smaller and the padding waste is <= 10% (only used for M,
    where padding x is cheap; K/N tiles must divide the pre-padded weight).
    """
    dim_a = _round_up(dim, align)
    cap_a = max(align, (cap // align) * align)
    if dim_a <= cap_a:
        return dim_a
    t = cap_a
    while t > align and dim_a % t != 0:
        t -= align
    if allow_pad and t * 2 <= cap_a:
        waste = (_round_up(dim, cap_a) - dim) / dim
        if waste <= 0.10:
            return cap_a
    return t


def linear_kernel(x_ref, w_ref, b_ref, o_ref):
    """One (tm, tn) f32 output tile; K is the innermost ("arbitrary") grid axis.

    The output block index is constant across k, so o_ref stays VMEM-resident
    across the K loop and doubles as the f32 accumulator (no scratch, no
    finalize copy pass).
    """
    k = pl.program_id(2)
    # bf16 operands feed the MXU at native rate; accumulate in f32.
    prod = jnp.dot(
        x_ref[...].astype(jnp.bfloat16),
        w_ref[...],
        preferred_element_type=jnp.float32,
    )

    @pl.when(k == 0)
    def _first():
        # First K step: write directly (no zero-fill) and fold the bias in
        # exactly once.
        o_ref[...] = prod + b_ref[...]

    @pl.when(k > 0)
    def _accumulate():
        o_ref[...] += prod


@functools.partial(jax.jit, static_argnames=("out_features", "tm", "tn", "tk"))
def linear_pallas(x, w, b, *, out_features=None, tm=512, tn=512, tk=1024):
    """x: (M, K) f32, w: (Kp, Np) bf16 pre-padded to 128-multiples (K <= Kp),
    b: (1, Np) f32. Returns (M, out_features) f32 == x @ w[:K, :out] + b."""
    M, K = x.shape
    Kp, Np = w.shape
    assert Kp % 128 == 0 and Np % 128 == 0, "pre-pad weight to 128-multiples at init"
    assert K <= Kp and b.shape == (1, Np)
    if out_features is None:
        out_features = Np

    # Tile selection: divisor-friendly (zero padding waste on K/N; padding only
    # allowed on M, where it is cheap).
    tm_e = _pick_tile(M, tm, 8, allow_pad=True)
    tn_e = _pick_tile(Np, tn, 128)
    tk_e = _pick_tile(Kp, tk, 128)
    Mp = _round_up(M, tm_e)

    # v7x has 2 TensorCores: ensure >=2 blocks on the parallel (i, j) axes when
    # possible so both cores get work (no-op on single-TC v5e/v6e).
    if (Mp // tm_e) * (Np // tn_e) < 2 and Np >= 256:
        t = ((tn_e // 2) // 128) * 128
        while t >= 128 and Np % t != 0:
            t -= 128
        if t >= 128:
            tn_e = t

    # Per-call padding touches only x (activations), never the weight.
    m_pad, k_pad = Mp - M, Kp - K
    if m_pad or k_pad:
        x = jnp.pad(x, ((0, m_pad), (0, k_pad)))

    grid = (Mp // tm_e, Np // tn_e, Kp // tk_e)

    out_p = pl.pallas_call(
        linear_kernel,
        out_shape=jax.ShapeDtypeStruct((Mp, Np), jnp.float32),
        grid_spec=pltpu.PrefetchScalarGridSpec(
            num_scalar_prefetch=0,
            grid=grid,
            in_specs=[
                pl.BlockSpec((tm_e, tk_e), lambda i, j, k: (i, k)),
                pl.BlockSpec((tk_e, tn_e), lambda i, j, k: (k, j)),
                pl.BlockSpec((1, tn_e), lambda i, j, k: (0, j)),
            ],
            out_specs=pl.BlockSpec((tm_e, tn_e), lambda i, j, k: (i, j)),
        ),
        compiler_params=pltpu.CompilerParams(
            # M/N independent -> shardable across TensorCores; K is the
            # reduction axis and must stay "arbitrary".
            dimension_semantics=("parallel", "parallel", "arbitrary"),
            vmem_limit_bytes=_vmem_limit_bytes(),
        ),
        cost_estimate=pl.CostEstimate(
            flops=2 * Mp * Kp * Np,
            transcendentals=0,
            bytes_accessed=4 * Mp * Kp + 2 * Kp * Np + 4 * Mp * Np + 4 * Np,
        ),
    )(x, w, b)

    if Mp != M or Np != out_features:
        return out_p[:M, :out_features]
    return out_p


class SoftMaxPallas:
    """Mirrors the PyTorch `SoftMax` module (which is just a Linear layer)."""

    def __init__(self, input_size, output_size, key):
        k_w, k_b = jax.random.split(key)
        # Deterministic init matching nn.Linear's uniform(-1/sqrt(in), 1/sqrt(in)).
        bound = 1.0 / (input_size ** 0.5)
        w = jax.random.uniform(
            k_w, (input_size, output_size), jnp.float32, -bound, bound
        )
        b = jax.random.uniform(k_b, (1, output_size), jnp.float32, -bound, bound)

        kp = _round_up(input_size, 128)
        npad = _round_up(output_size, 128)
        # Pad ONCE here (never per call) and pre-cast to bf16 for the MXU.
        self.weight_t = jnp.pad(
            w, ((0, kp - input_size), (0, npad - output_size))
        ).astype(jnp.bfloat16)
        self.bias = jnp.pad(b, ((0, 0), (0, npad - output_size)))
        self.input_size = input_size
        self.output_size = output_size

    def __call__(self, x):
        return linear_pallas(
            x, self.weight_t, self.bias, out_features=self.output_size
        )

    def reference(self, x):
        """Pure-JAX reference with the same bf16-weight / bf16-x numerics."""
        w = self.weight_t[: self.input_size, : self.output_size].astype(jnp.float32)
        xb = x.astype(jnp.bfloat16).astype(jnp.float32)
        return (
            jnp.dot(xb, w, precision=jax.lax.Precision.HIGHEST)
            + self.bias[:, : self.output_size]
        )


if __name__ == "__main__":
    key = jax.random.PRNGKey(0)
    k1, k2, k3, k4 = jax.random.split(key, 4)

    # --- Small shape (module demo size). Single-tile path. -------------------
    batch, input_size, output_size = 8, 32, 16
    x = jax.random.normal(k1, (batch, input_size), jnp.float32)
    model = SoftMaxPallas(input_size, output_size, k2)
    z = jax.block_until_ready(model(x))
    z_ref = model.reference(x)
    assert z.shape == (batch, output_size)
    assert jnp.allclose(z, z_ref, atol=2e-3, rtol=2e-3)

    # --- Larger shape exercising multi-block N (and the K-accumulation path).
    M2, K2, N2 = 384, 640, 384
    x2 = jax.random.normal(k3, (M2, K2), jnp.float32)
    model2 = SoftMaxPallas(K2, N2, k4)
    z2 = jax.block_until_ready(model2(x2))
    z2_ref = model2.reference(x2)
    assert z2.shape == (M2, N2)
    assert jnp.allclose(z2, z2_ref, atol=2e-3, rtol=2e-3)

    print("KERNEL_OK")
</pallas_src>

<mosaic_0001>
module attributes {stable_mosaic.version = 11 : i64} {
  func.func @linear_kernel(%arg0: i32, %arg1: i32, %arg2: i32, %arg3: memref<8x128xf32, #tpu.memory_space<vmem>>, %arg4: memref<128x128xbf16, #tpu.memory_space<vmem>>, %arg5: memref<1x128xf32, #tpu.memory_space<vmem>>, %arg6: memref<8x128xf32, #tpu.memory_space<vmem>>) attributes {dimension_semantics = [#tpu.dimension_semantics<parallel>, #tpu.dimension_semantics<parallel>, #tpu.dimension_semantics<arbitrary>], iteration_bounds = array<i64: 1, 1, 1>, scalar_prefetch = 0 : i64, scratch_operands = 0 : i64, tpu.core_type = #tpu.core_type<tc>, window_params = [{transform_indices = @transform_0, window_bounds = array<i64: 8, 128>}, {transform_indices = @transform_1, window_bounds = array<i64: 128, 128>}, {transform_indices = @transform_2, window_bounds = array<i64: 1, 128>}, {transform_indices = @transform_3, window_bounds = array<i64: 8, 128>}]} {
    %c0 = arith.constant 0 : index
    %c0_0 = arith.constant 0 : index
    %0 = vector.load %arg3[%c0, %c0_0] : memref<8x128xf32, #tpu.memory_space<vmem>>, vector<8x128xf32>
    %1 = arith.truncf %0 : vector<8x128xf32> to vector<8x128xbf16>
    %c0_1 = arith.constant 0 : index
    %c0_2 = arith.constant 0 : index
    %2 = vector.load %arg4[%c0_1, %c0_2] : memref<128x128xbf16, #tpu.memory_space<vmem>>, vector<128x128xbf16>
    %cst = arith.constant dense<0.000000e+00> : vector<8x128xf32>
    %3 = tpu.matmul %1, %2, %cst {dimension_numbers = #tpu.dot_dimension_numbers<[1], [0], [0], [1], [0, 0, 1, 1], [], []>} : vector<8x128xbf16>, vector<128x128xbf16>, vector<8x128xf32> -> vector<8x128xf32>
    %c0_i32 = arith.constant 0 : i32
    %4 = arith.cmpi eq, %arg2, %c0_i32 : i32
    %5 = arith.extui %4 : i1 to i32
    %c0_i32_3 = arith.constant 0 : i32
    %6 = arith.cmpi ne, %5, %c0_i32_3 : i32
    scf.if %6 {
      %c0_6 = arith.constant 0 : index
      %c0_7 = arith.constant 0 : index
      %10 = vector.load %arg5[%c0_6, %c0_7] : memref<1x128xf32, #tpu.memory_space<vmem>>, vector<1x128xf32>
      %11 = vector.broadcast %10 : vector<1x128xf32> to vector<8x128xf32>
      %12 = arith.addf %3, %11 : vector<8x128xf32>
      %c0_8 = arith.constant 0 : index
      %c0_9 = arith.constant 0 : index
      %13 = vector.load %arg6[%c0_8, %c0_9] : memref<8x128xf32, #tpu.memory_space<vmem>>, vector<8x128xf32>
      tpu.vector_store %arg6[%c0_8, %c0_9], %12 {strides = array<i32>} : memref<8x128xf32, #tpu.memory_space<vmem>>, vector<8x128xf32>,
    } else {
    }
    %c0_i32_4 = arith.constant 0 : i32
    %7 = arith.cmpi sgt, %arg2, %c0_i32_4 : i32
    %8 = arith.extui %7 : i1 to i32
    %c0_i32_5 = arith.constant 0 : i32
    %9 = arith.cmpi ne, %8, %c0_i32_5 : i32
    scf.if %9 {
      %c0_6 = arith.constant 0 : index
      %c0_7 = arith.constant 0 : index
      %10 = vector.load %arg6[%c0_6, %c0_7] : memref<8x128xf32, #tpu.memory_space<vmem>>, vector<8x128xf32>
      %11 = arith.addf %10, %3 : vector<8x128xf32>
      %c0_8 = arith.constant 0 : index
      %c0_9 = arith.constant 0 : index
      %12 = vector.load %arg6[%c0_8, %c0_9] : memref<8x128xf32, #tpu.memory_space<vmem>>, vector<8x128xf32>
      tpu.vector_store %arg6[%c0_8, %c0_9], %11 {strides = array<i32>} : memref<8x128xf32, #tpu.memory_space<vmem>>, vector<8x128xf32>,
    } else {
    }
    return
  }
  func.func @transform_0(%arg0: i32, %arg1: i32, %arg2: i32) -> (i32, i32) {
    %c0_i32 = arith.constant 0 : i32
    return %arg0, %arg2 : i32, i32
  }
  func.func @transform_1(%arg0: i32, %arg1: i32, %arg2: i32) -> (i32, i32) {
    %c0_i32 = arith.constant 0 : i32
    return %arg2, %arg1 : i32, i32
  }
  func.func @transform_2(%arg0: i32, %arg1: i32, %arg2: i32) -> (i32, i32) {
    %c0_i32 = arith.constant 0 : i32
    %c0_i32_0 = arith.constant 0 : i32
    return %c0_i32, %arg1 : i32, i32
  }
  func.func @transform_3(%arg0: i32, %arg1: i32, %arg2: i32) -> (i32, i32) {
    %c0_i32 = arith.constant 0 : i32
    return %arg0, %arg1 : i32, i32
  }
}

</mosaic_0001>

<bundles_post_ra>
// kernel: linear_pallas.1
= control target key start
LH: loop header
LB: loop body
LE: loop exit
PB: predicated region body
PF: predicated region fallthrough
CT: control target
= control target key end

     0   :  { %8 = vsyncpa [#allocation3], 0  ;;  %s327_s0 = inlined_call_operand.vmem [shape: f32[8,128], index: 0, kind: input, shape index: {}]   ;;  %s328_s1 = inlined_call_operand.hbm [shape: bf16[128,128], index: 1, kind: input, shape index: {}]   ;;  %s329_s2 = inlined_call_operand.vmem [shape: f32[1,128], index: 2, kind: input, shape index: {}]   ;;  %s330_s3 = inlined_call_operand.hbm [shape: f32[8,128], index: 3, kind: output, shape index: {}]  }
   0x1   :  { %9 = vsyncpa [#allocation4], 0  ;;  %s271_s12 = smov [#allocation2]   ;;  %s223_s16 = scalar_lea.hbm %s328_s1, 1024 }
   0x2   :  { %s17_s13 = sshll.u32 %s271_s12, 4  ;;  %p224_p0 = scmp.ne.s32.totalorder %s328_s1, %s223_s16  ;;  %s18_s13 = int_to_ptr.vmem [resolvable:$true] %s17_s13 }
   0x3   :  { %p227_p1 = scmp.lt.u32.totalorder %s223_s16, %s328_s1 }
   0x5   :  { %p229_p2 = pnand %p227_p1, %p224_p0 }
   0x7   :  { %232 = shalt.err (!%p229_p2)
}
   0x8   :  { %s233_s21 = scalar_lea.vmem %s18_s13, 1024  ;;  %p238_p4 = scmp.lt.s32.totalorder %s18_s13, %s18_s13 }
   0x9   :  { %p234_p3 = scmp.ne.s32.totalorder %s18_s13, %s233_s21  ;;  %p239_p5 = scmp.lt.s32.totalorder %s233_s21, %s233_s21 }
   0xb   :  { %p240_p6 = por %p239_p5, %p238_p4 }
   0xd   :  { %p241_p7 = pnand %p240_p6, %p234_p3 }
   0xf   :  { %244 = shalt.err (!%p241_p7)
}
  0x10   :  { %s272_s22 = smov 64   ;;  %s273_s23 = smov 4  }
  0x11   :  { %23 = dma.hbm_to_vmem [thread:$0]  %s328_s1, 1024, %s18_s13, [#allocation3], %s272_s22, %s272_s22, %s273_s23  }
  0x12   :  { %267 = dma.done.wait [#allocation3], 1024  }
  0x13   :  { %268 = vsyncadd [#allocation3], 4294966272  ;;  %v274_v0 = vmov 0.0   ;;  %vm275_vm0 = vmmov 0   ;;  %v215_v1 = vld [vmem:[#allocation2] sm:$0xff]   ;;  %v216_v2 = vld [vmem:[#allocation2 + $0x8] sm:$0xff]  }
  0x14   :  { %189 = vmatprep.subr.bf16.mxu0 %v274_v0  ;;  %205 = vmatprep.mubr.msk.bf16.mxu0 %vm275_vm0, %v274_v0  ;;  %v217_v3 = vld [vmem:[#allocation2 + $0x10] sm:$0xff]   ;;  %v218_v4 = vld [vmem:[#allocation2 + $0x18] sm:$0xff]   ;;  %v219_v5 = vld [vmem:[#allocation2 + $0x20] sm:$0xff]   ;;  %s276_s29 = smov [#allocation5]  }
  0x15   :  { %190 = vmatpush3.bf16.msra.mxu0 %v215_v1  ;;  %v220_v6 = vld [vmem:[#allocation2 + $0x28] sm:$0xff]   ;;  %v221_v7 = vld [vmem:[#allocation2 + $0x30] sm:$0xff]   ;;  %v222_v8 = vld [vmem:[#allocation2 + $0x38] sm:$0xff]   ;;  %s162_s30 = sshll.u32 %s276_s29, 4  ;;  %s163_s30 = int_to_ptr.vmem [resolvable:$true] %s162_s30 }
  0x16   :  { %191 = vmatprep.subr.bf16.mxu0 %v274_v0  ;;  %v30_v9 = vld [vmem:[%s327_s0] sm:$0xff]  ;;  %s245_s4 = scalar_lea.vmem %s163_s30, 128  ;;  %p250_p9 = scmp.lt.s32.totalorder %s163_s30, %s163_s30 }
  0x17   :  { %v31_v10 = vpack.c.bf16 %v30_v9, %v30_v9  ;;  %v179_v11 = vld [vmem:[%s329_s2] ss:$0 sm:$0xff]  ;;  %p246_p8 = scmp.ne.s32.totalorder %s163_s30, %s245_s4  ;;  %p251_p10 = scmp.lt.s32.totalorder %s245_s4, %s245_s4 }
  0x19   :  { %192 = vmatpush3.bf16.msra.mxu0 %v216_v2  ;;  %p252_p11 = por %p251_p10, %p250_p9 }
  0x1a   :  { %193 = vmatprep.subr.bf16.mxu0 %v274_v0 }
  0x1b   :  { %p253_p12 = pnand %p252_p11, %p246_p8 }
  0x1d   :  { %194 = vmatpush3.bf16.msra.mxu0 %v217_v3 }
  0x1e   :  { %195 = vmatprep.subr.bf16.mxu0 %v274_v0 }
  0x21   :  { %196 = vmatpush3.bf16.msra.mxu0 %v218_v4 }
  0x22   :  { %197 = vmatprep.subr.bf16.mxu0 %v274_v0 }
  0x25   :  { %198 = vmatpush3.bf16.msra.mxu0 %v219_v5 }
  0x26   :  { %199 = vmatprep.subr.bf16.mxu0 %v274_v0 }
  0x29   :  { %200 = vmatpush3.bf16.msra.mxu0 %v220_v6 }
  0x2a   :  { %201 = vmatprep.subr.bf16.mxu0 %v274_v0 }
  0x2d   :  { %202 = vmatpush3.bf16.msra.mxu0 %v221_v7 }
  0x2e   :  { %203 = vmatprep.subr.bf16.mxu0 %v274_v0 }
  0x31   :  { %204 = vmatpush3.bf16.msra.mxu0 %v222_v8 }
  0x34   :  { %206 = vmatmul.mubr.bf16.vlgmr.msra.gmra.mrb[0].mxu0 %v31_v10 }
 0x107   :  { %v130_v12 = vpop.f32.mrb[0].mxu0 }
 0x108   :  { %v147_v13 = vadd.f32 %v179_v11, %v130_v12  ;;  %v207_v14 = vpop.f32.mrb[1].mxu0 }
 0x109   :  { %v133_v15 = vpop.f32.mrb[2].mxu0 }
 0x10a   :  { %148 = vst [vmem:[#allocation5] sm:$0xff] %v147_v13  ;;  %v208_v16 = vpop.f32.mrb[3].mxu0 }
 0x10b   :  { %256 = shalt.err (!%p253_p12)
}
 0x10c   :  { %s257_s2 = scalar_lea.hbm %s330_s3, 128 }
 0x10d   :  { %p258_p13 = scmp.ne.s32.totalorder %s330_s3, %s257_s2  ;;  %p261_p0 = scmp.lt.u32.totalorder %s257_s2, %s330_s3 }
 0x10f   :  { %p263_p1 = pnand %p261_p0, %p258_p13 }
 0x111   :  { %266 = shalt.err (!%p263_p1)
}
 0x112   :  { %165 = dma.vmem_to_hbm [thread:$0]  %s163_s30, 128, %s330_s3, [#allocation4]  }
 0x113   :  { %269 = dma.done.wait [#allocation4], 128  }
 0x114   :  { %270 = vsyncadd [#allocation4], 4294967168 }
 0x115   :  { %169 = vsyncpa [#allocation3], 1 }
 0x116   :  { %170 = vsyncpa [#allocation4], 1 }

</bundles_post_ra>
